<compile_context>
chip_gen: v7x
topology: tpu7x:2x2x1
jax: 0.10.0
libtpu: 0.0.40
codegen_flags: <defaults>
</compile_context>

<pallas_src>
import functools

import jax
import jax.numpy as jnp
from jax import lax
from jax.experimental import pallas as pl
from jax.experimental.pallas import tpu as pltpu


# ---------------------------------------------------------------------------
# Kernel: one grid step = one (batch block, time chunk); time loop is in-kernel.
# ---------------------------------------------------------------------------
def rnn_seq_kernel(xw_ref, h0_ref, wh_ref, out_ref, hid_ref, h_scratch, *,
                   hidden_size):
    c = pl.program_id(1)                     # time-chunk index (serial axis)
    n_chunks = pl.num_programs(1)
    chunk, bsz, ho = xw_ref.shape            # (Tc, Bc, H + O_pad)

    # Initial hidden state at the start of each batch block's sequence.
    @pl.when(c == 0)
    def _():
        h_scratch[...] = h0_ref[...]

    wh = wh_ref[...]                         # (H, H + O_pad), VMEM-resident
    h_init = h_scratch[...]                  # (Bc, H)
    y_init = jnp.zeros((bsz, ho), jnp.float32)

    # Per step: y = [new_hidden | logits] = XW[t] + h @ W_h   (bias already in XW)
    def step(t, carry):
        h, _ = carry
        y = xw_ref[t] + jnp.dot(h, wh, preferred_element_type=jnp.float32)
        return (y[:, :hidden_size], y)

    h, y = lax.fori_loop(0, chunk, step, (h_init, y_init), unroll=True)
    h_scratch[...] = h                       # carry recurrent state to next chunk

    # Only the final step's output / hidden leave the chip.
    @pl.when(c == n_chunks - 1)
    def _():
        logits = y[:, hidden_size:]          # (Bc, O_pad); padded lanes ~ -1e30
        m = jnp.max(logits, axis=-1, keepdims=True)
        shifted = logits - m
        lse = jnp.log(jnp.sum(jnp.exp(shifted), axis=-1, keepdims=True))
        out_ref[...] = (shifted - lse).astype(out_ref.dtype)
        hid_ref[...] = h.astype(hid_ref.dtype)


# ---------------------------------------------------------------------------
# Wrappers
# ---------------------------------------------------------------------------
def rnn_forward_sequence(x_seq, h0, packed_params, *, time_chunk=None,
                         batch_block=None):
    """Run T RNN steps fused in one kernel.

    x_seq: (T, B, input_size) f32 inputs (e.g. one-hot letters)
    h0:    (B, H) f32 initial hidden
    Returns (final_log_softmax_padded (B, O_pad), final_hidden (B, H)).
    """
    w_x, w_h, b = packed_params
    T, B, _ = x_seq.shape
    H = h0.shape[1]
    HO = w_h.shape[1]                        # H + O_pad
    O_pad = HO - H

    # Hoist the input projection + bias off the serial chain: ONE big matmul
    # instead of T tiny matmuls on the recurrence critical path.
    xw = (jnp.dot(x_seq.reshape(T * B, x_seq.shape[2]), w_x,
                  preferred_element_type=jnp.float32) + b).reshape(T, B, HO)

    Tc = T if time_chunk is None else time_chunk
    Bc = B if batch_block is None else batch_block
    assert T % Tc == 0 and B % Bc == 0

    kernel = functools.partial(rnn_seq_kernel, hidden_size=H)

    out_pad, hid = pl.pallas_call(
        kernel,
        out_shape=(
            jax.ShapeDtypeStruct((B, O_pad), jnp.float32),  # final log-softmax (padded)
            jax.ShapeDtypeStruct((B, H), jnp.float32),      # final hidden state
        ),
        grid_spec=pltpu.PrefetchScalarGridSpec(
            num_scalar_prefetch=0,
            grid=(B // Bc, T // Tc),          # (batch blocks, time chunks)
            in_specs=[
                # Per-(batch block, chunk) slab of precomputed XW.
                pl.BlockSpec((Tc, Bc, HO), lambda bb, c: (c, bb, 0)),
                # Initial hidden: per batch block, constant across chunks.
                pl.BlockSpec((Bc, H), lambda bb, c: (bb, 0)),
                # Recurrent weight: constant index_map => VMEM-resident.
                pl.BlockSpec((H, HO), lambda bb, c: (0, 0)),
            ],
            out_specs=(
                pl.BlockSpec((Bc, O_pad), lambda bb, c: (bb, 0)),
                pl.BlockSpec((Bc, H), lambda bb, c: (bb, 0)),
            ),
            scratch_shapes=[pltpu.VMEM((Bc, H), jnp.float32)],  # recurrent state
        ),
        compiler_params=pltpu.CompilerParams(
            dimension_semantics=("parallel", "arbitrary")),     # time is a recurrence
    )(xw, h0, w_h)
    return out_pad, hid


def rnn_forward(input_tensor, hidden_tensor, packed_params, output_size):
    """Single RNN step == exactly the PyTorch module's forward()."""
    out_pad, hid = rnn_forward_sequence(input_tensor[None], hidden_tensor,
                                        packed_params)
    return out_pad[:, :output_size], hid


# ---------------------------------------------------------------------------
# Parameter construction
# ---------------------------------------------------------------------------
def init_params(key, input_size, hidden_size, output_size):
    """nn.Linear-style U(-1/sqrt(fan_in), 1/sqrt(fan_in)) init, stored
    transposed: (in_features, out_features)."""
    k1, k2, k3, k4 = jax.random.split(key, 4)
    fan_in = input_size + hidden_size
    bound = 1.0 / jnp.sqrt(jnp.float32(fan_in))
    w_i2h_t = jax.random.uniform(k1, (fan_in, hidden_size), jnp.float32, -bound, bound)
    b_i2h = jax.random.uniform(k2, (hidden_size,), jnp.float32, -bound, bound)
    w_i2o_t = jax.random.uniform(k3, (fan_in, output_size), jnp.float32, -bound, bound)
    b_i2o = jax.random.uniform(k4, (output_size,), jnp.float32, -bound, bound)
    return w_i2h_t, b_i2h, w_i2o_t, b_i2o


def pack_params(raw_params, input_size, hidden_size, output_size, o_pad):
    """Split combined-input weights into (input, recurrent) parts, fuse i2h|i2o
    along the output dim, pad logits to a lane-dense width, fold biases."""
    w_i2h_t, b_i2h, w_i2o_t, b_i2o = raw_params
    I, H, O = input_size, hidden_size, output_size

    # [hidden | logits] column layout.
    w_x = jnp.concatenate([w_i2h_t[:I], w_i2o_t[:I]], axis=1)   # (I, H+O)
    w_h = jnp.concatenate([w_i2h_t[I:], w_i2o_t[I:]], axis=1)   # (H, H+O)

    # Pad logit columns O -> o_pad with zeros.
    w_x = jnp.pad(w_x, ((0, 0), (0, o_pad - O)))                # (I, H+o_pad)
    w_h = jnp.pad(w_h, ((0, 0), (0, o_pad - O)))                # (H, H+o_pad)

    # Bias (folded into XW in the wrapper): padded logit lanes get -1e30 so
    # they vanish in the log-softmax normalizer.
    b = jnp.concatenate([
        b_i2h, b_i2o, jnp.full((o_pad - O,), -1e30, jnp.float32)
    ]).reshape(1, H + o_pad)
    return w_x, w_h, b


# ---------------------------------------------------------------------------
# Demo / correctness check
# ---------------------------------------------------------------------------
if __name__ == "__main__":
    # Shapes from the tutorial module: n_letters=57, n_hidden=128, n_categories=18.
    input_size, hidden_size, output_size = 57, 128, 18
    batch, seq_len = 8, 16          # batch >= 8 fills f32 sublanes
    O_PAD = 128                     # lane-dense padded logit width

    key = jax.random.PRNGKey(0)
    kp, kl = jax.random.split(key)
    raw_params = init_params(kp, input_size, hidden_size, output_size)
    packed = pack_params(raw_params, input_size, hidden_size, output_size, O_PAD)

    # Random letter sequences -> one-hot inputs (T, B, n_letters).
    letters = jax.random.randint(kl, (seq_len, batch), 0, input_size)
    x_seq = jax.nn.one_hot(letters, input_size, dtype=jnp.float32)
    h0 = jnp.zeros((batch, hidden_size), jnp.float32)           # rnn.init_hidden()

    # Fused multi-step kernel (whole sequence in one in-kernel time loop).
    out_pad, hid = rnn_forward_sequence(x_seq, h0, packed)
    out = out_pad[:, :output_size]
    jax.block_until_ready((out, hid))

    # Plain-JAX reference: apply the module's forward step by step.
    w_i2h_t, b_i2h, w_i2o_t, b_i2o = raw_params
    h_ref = h0
    out_ref = None
    for t in range(seq_len):
        combined = jnp.concatenate([x_seq[t], h_ref], axis=1)
        new_h = combined @ w_i2h_t + b_i2h
        out_ref = jax.nn.log_softmax(combined @ w_i2o_t + b_i2o, axis=1)
        h_ref = new_h
    assert jnp.allclose(out, out_ref, atol=1e-4), "sequence output mismatch"
    assert jnp.allclose(hid, h_ref, atol=1e-4), "sequence hidden mismatch"

    # Single-step path (T=1) == exact PyTorch module forward().
    out1, hid1 = rnn_forward(x_seq[0], h0, packed, output_size)
    combined = jnp.concatenate([x_seq[0], h0], axis=1)
    h1_ref = combined @ w_i2h_t + b_i2h
    o1_ref = jax.nn.log_softmax(combined @ w_i2o_t + b_i2o, axis=1)
    jax.block_until_ready((out1, hid1))
    assert jnp.allclose(out1, o1_ref, atol=1e-4), "single-step output mismatch"
    assert jnp.allclose(hid1, h1_ref, atol=1e-4), "single-step hidden mismatch"

    print("KERNEL_OK")
</pallas_src>

<mosaic_0001>
module attributes {stable_mosaic.version = 11 : i64} {
  func.func @rnn_seq_kernel(%arg0: i32, %arg1: i32, %arg2: memref<16x8x256xf32, #tpu.memory_space<vmem>>, %arg3: memref<8x128xf32, #tpu.memory_space<vmem>>, %arg4: memref<128x256xf32, #tpu.memory_space<vmem>>, %arg5: memref<8x128xf32, #tpu.memory_space<vmem>>, %arg6: memref<8x128xf32, #tpu.memory_space<vmem>>, %arg7: memref<8x128xf32, #tpu.memory_space<vmem>>) attributes {dimension_semantics = [#tpu.dimension_semantics<parallel>, #tpu.dimension_semantics<arbitrary>], iteration_bounds = array<i64: 1, 1>, scalar_prefetch = 0 : i64, scratch_operands = 1 : i64, tpu.core_type = #tpu.core_type<tc>, window_params = [{transform_indices = @transform_0, window_bounds = array<i64: 16, 8, 256>}, {transform_indices = @transform_1, window_bounds = array<i64: 8, 128>}, {pipeline_mode = #tpu.pipeline_mode<synchronous>, transform_indices = @transform_2, window_bounds = array<i64: 128, 256>}, {transform_indices = @transform_3, window_bounds = array<i64: 8, 128>}, {transform_indices = @transform_4, window_bounds = array<i64: 8, 128>}]} {
    %c0_i32 = arith.constant 0 : i32
    %0 = arith.cmpi eq, %arg1, %c0_i32 : i32
    %1 = arith.extui %0 : i1 to i32
    %c0_i32_0 = arith.constant 0 : i32
    %2 = arith.cmpi ne, %1, %c0_i32_0 : i32
    scf.if %2 {
      %c0_57 = arith.constant 0 : index
      %c0_58 = arith.constant 0 : index
      %106 = vector.load %arg3[%c0_57, %c0_58] : memref<8x128xf32, #tpu.memory_space<vmem>>, vector<8x128xf32>
      %c0_59 = arith.constant 0 : index
      %c0_60 = arith.constant 0 : index
      %107 = vector.load %arg7[%c0_59, %c0_60] : memref<8x128xf32, #tpu.memory_space<vmem>>, vector<8x128xf32>
      tpu.vector_store %arg7[%c0_59, %c0_60], %106 {strides = array<i32>} : memref<8x128xf32, #tpu.memory_space<vmem>>, vector<8x128xf32>,
    } else {
    }
    %c0 = arith.constant 0 : index
    %c0_1 = arith.constant 0 : index
    %3 = vector.load %arg4[%c0, %c0_1] : memref<128x256xf32, #tpu.memory_space<vmem>>, vector<128x256xf32>
    %c0_2 = arith.constant 0 : index
    %c0_3 = arith.constant 0 : index
    %4 = vector.load %arg7[%c0_2, %c0_3] : memref<8x128xf32, #tpu.memory_space<vmem>>, vector<8x128xf32>
    %cst = arith.constant 0.000000e+00 : f32
    %5 = vector.broadcast %cst : f32 to vector<8x256xf32>
    %c0_i32_4 = arith.constant 0 : i32
    %6 = arith.index_cast %c0_i32_4 : i32 to index
    %c0_5 = arith.constant 0 : index
    %c0_6 = arith.constant 0 : index
    %7 = vector.load %arg2[%6, %c0_5, %c0_6] : memref<16x8x256xf32, #tpu.memory_space<vmem>>, vector<1x8x256xf32>
    %8 = vector.shape_cast %7 : vector<1x8x256xf32> to vector<8x256xf32>
    %cst_7 = arith.constant dense<0.000000e+00> : vector<8x256xf32>
    %9 = tpu.matmul %4, %3, %cst_7 {dimension_numbers = #tpu.dot_dimension_numbers<[1], [0], [0], [1], [0, 0, 1, 1], [], []>} : vector<8x128xf32>, vector<128x256xf32>, vector<8x256xf32> -> vector<8x256xf32>
    %10 = arith.addf %8, %9 : vector<8x256xf32>
    %11 = vector.extract_strided_slice %10 {offsets = [0, 0], sizes = [8, 128], strides = [1, 1]} : vector<8x256xf32> to vector<8x128xf32>
    %c1_i32 = arith.constant 1 : i32
    %12 = arith.index_cast %c1_i32 : i32 to index
    %c0_8 = arith.constant 0 : index
    %c0_9 = arith.constant 0 : index
    %13 = vector.load %arg2[%12, %c0_8, %c0_9] : memref<16x8x256xf32, #tpu.memory_space<vmem>>, vector<1x8x256xf32>
    %14 = vector.shape_cast %13 : vector<1x8x256xf32> to vector<8x256xf32>
    %cst_10 = arith.constant dense<0.000000e+00> : vector<8x256xf32>
    %15 = tpu.matmul %11, %3, %cst_10 {dimension_numbers = #tpu.dot_dimension_numbers<[1], [0], [0], [1], [0, 0, 1, 1], [], []>} : vector<8x128xf32>, vector<128x256xf32>, vector<8x256xf32> -> vector<8x256xf32>
    %16 = arith.addf %14, %15 : vector<8x256xf32>
    %17 = vector.extract_strided_slice %16 {offsets = [0, 0], sizes = [8, 128], strides = [1, 1]} : vector<8x256xf32> to vector<8x128xf32>
    %c2_i32 = arith.constant 2 : i32
    %18 = arith.index_cast %c2_i32 : i32 to index
    %c0_11 = arith.constant 0 : index
    %c0_12 = arith.constant 0 : index
    %19 = vector.load %arg2[%18, %c0_11, %c0_12] : memref<16x8x256xf32, #tpu.memory_space<vmem>>, vector<1x8x256xf32>
    %20 = vector.shape_cast %19 : vector<1x8x256xf32> to vector<8x256xf32>
    %cst_13 = arith.constant dense<0.000000e+00> : vector<8x256xf32>
    %21 = tpu.matmul %17, %3, %cst_13 {dimension_numbers = #tpu.dot_dimension_numbers<[1], [0], [0], [1], [0, 0, 1, 1], [], []>} : vector<8x128xf32>, vector<128x256xf32>, vector<8x256xf32> -> vector<8x256xf32>
    %22 = arith.addf %20, %21 : vector<8x256xf32>
    %23 = vector.extract_strided_slice %22 {offsets = [0, 0], sizes = [8, 128], strides = [1, 1]} : vector<8x256xf32> to vector<8x128xf32>
    %c3_i32 = arith.constant 3 : i32
    %24 = arith.index_cast %c3_i32 : i32 to index
    %c0_14 = arith.constant 0 : index
    %c0_15 = arith.constant 0 : index
    %25 = vector.load %arg2[%24, %c0_14, %c0_15] : memref<16x8x256xf32, #tpu.memory_space<vmem>>, vector<1x8x256xf32>
    %26 = vector.shape_cast %25 : vector<1x8x256xf32> to vector<8x256xf32>
    %cst_16 = arith.constant dense<0.000000e+00> : vector<8x256xf32>
    %27 = tpu.matmul %23, %3, %cst_16 {dimension_numbers = #tpu.dot_dimension_numbers<[1], [0], [0], [1], [0, 0, 1, 1], [], []>} : vector<8x128xf32>, vector<128x256xf32>, vector<8x256xf32> -> vector<8x256xf32>
    %28 = arith.addf %26, %27 : vector<8x256xf32>
    %29 = vector.extract_strided_slice %28 {offsets = [0, 0], sizes = [8, 128], strides = [1, 1]} : vector<8x256xf32> to vector<8x128xf32>
    %c4_i32 = arith.constant 4 : i32
    %30 = arith.index_cast %c4_i32 : i32 to index
    %c0_17 = arith.constant 0 : index
    %c0_18 = arith.constant 0 : index
    %31 = vector.load %arg2[%30, %c0_17, %c0_18] : memref<16x8x256xf32, #tpu.memory_space<vmem>>, vector<1x8x256xf32>
    %32 = vector.shape_cast %31 : vector<1x8x256xf32> to vector<8x256xf32>
    %cst_19 = arith.constant dense<0.000000e+00> : vector<8x256xf32>
    %33 = tpu.matmul %29, %3, %cst_19 {dimension_numbers = #tpu.dot_dimension_numbers<[1], [0], [0], [1], [0, 0, 1, 1], [], []>} : vector<8x128xf32>, vector<128x256xf32>, vector<8x256xf32> -> vector<8x256xf32>
    %34 = arith.addf %32, %33 : vector<8x256xf32>
    %35 = vector.extract_strided_slice %34 {offsets = [0, 0], sizes = [8, 128], strides = [1, 1]} : vector<8x256xf32> to vector<8x128xf32>
    %c5_i32 = arith.constant 5 : i32
    %36 = arith.index_cast %c5_i32 : i32 to index
    %c0_20 = arith.constant 0 : index
    %c0_21 = arith.constant 0 : index
    %37 = vector.load %arg2[%36, %c0_20, %c0_21] : memref<16x8x256xf32, #tpu.memory_space<vmem>>, vector<1x8x256xf32>
    %38 = vector.shape_cast %37 : vector<1x8x256xf32> to vector<8x256xf32>
    %cst_22 = arith.constant dense<0.000000e+00> : vector<8x256xf32>
    %39 = tpu.matmul %35, %3, %cst_22 {dimension_numbers = #tpu.dot_dimension_numbers<[1], [0], [0], [1], [0, 0, 1, 1], [], []>} : vector<8x128xf32>, vector<128x256xf32>, vector<8x256xf32> -> vector<8x256xf32>
    %40 = arith.addf %38, %39 : vector<8x256xf32>
    %41 = vector.extract_strided_slice %40 {offsets = [0, 0], sizes = [8, 128], strides = [1, 1]} : vector<8x256xf32> to vector<8x128xf32>
    %c6_i32 = arith.constant 6 : i32
    %42 = arith.index_cast %c6_i32 : i32 to index
    %c0_23 = arith.constant 0 : index
    %c0_24 = arith.constant 0 : index
    %43 = vector.load %arg2[%42, %c0_23, %c0_24] : memref<16x8x256xf32, #tpu.memory_space<vmem>>, vector<1x8x256xf32>
    %44 = vector.shape_cast %43 : vector<1x8x256xf32> to vector<8x256xf32>
    %cst_25 = arith.constant dense<0.000000e+00> : vector<8x256xf32>
    %45 = tpu.matmul %41, %3, %cst_25 {dimension_numbers = #tpu.dot_dimension_numbers<[1], [0], [0], [1], [0, 0, 1, 1], [], []>} : vector<8x128xf32>, vector<128x256xf32>, vector<8x256xf32> -> vector<8x256xf32>
    %46 = arith.addf %44, %45 : vector<8x256xf32>
    %47 = vector.extract_strided_slice %46 {offsets = [0, 0], sizes = [8, 128], strides = [1, 1]} : vector<8x256xf32> to vector<8x128xf32>
    %c7_i32 = arith.constant 7 : i32
    %48 = arith.index_cast %c7_i32 : i32 to index
    %c0_26 = arith.constant 0 : index
    %c0_27 = arith.constant 0 : index
    %49 = vector.load %arg2[%48, %c0_26, %c0_27] : memref<16x8x256xf32, #tpu.memory_space<vmem>>, vector<1x8x256xf32>
    %50 = vector.shape_cast %49 : vector<1x8x256xf32> to vector<8x256xf32>
    %cst_28 = arith.constant dense<0.000000e+00> : vector<8x256xf32>
    %51 = tpu.matmul %47, %3, %cst_28 {dimension_numbers = #tpu.dot_dimension_numbers<[1], [0], [0], [1], [0, 0, 1, 1], [], []>} : vector<8x128xf32>, vector<128x256xf32>, vector<8x256xf32> -> vector<8x256xf32>
    %52 = arith.addf %50, %51 : vector<8x256xf32>
    %53 = vector.extract_strided_slice %52 {offsets = [0, 0], sizes = [8, 128], strides = [1, 1]} : vector<8x256xf32> to vector<8x128xf32>
    %c8_i32 = arith.constant 8 : i32
    %54 = arith.index_cast %c8_i32 : i32 to index
    %c0_29 = arith.constant 0 : index
    %c0_30 = arith.constant 0 : index
    %55 = vector.load %arg2[%54, %c0_29, %c0_30] : memref<16x8x256xf32, #tpu.memory_space<vmem>>, vector<1x8x256xf32>
    %56 = vector.shape_cast %55 : vector<1x8x256xf32> to vector<8x256xf32>
    %cst_31 = arith.constant dense<0.000000e+00> : vector<8x256xf32>
    %57 = tpu.matmul %53, %3, %cst_31 {dimension_numbers = #tpu.dot_dimension_numbers<[1], [0], [0], [1], [0, 0, 1, 1], [], []>} : vector<8x128xf32>, vector<128x256xf32>, vector<8x256xf32> -> vector<8x256xf32>
    %58 = arith.addf %56, %57 : vector<8x256xf32>
    %59 = vector.extract_strided_slice %58 {offsets = [0, 0], sizes = [8, 128], strides = [1, 1]} : vector<8x256xf32> to vector<8x128xf32>
    %c9_i32 = arith.constant 9 : i32
    %60 = arith.index_cast %c9_i32 : i32 to index
    %c0_32 = arith.constant 0 : index
    %c0_33 = arith.constant 0 : index
    %61 = vector.load %arg2[%60, %c0_32, %c0_33] : memref<16x8x256xf32, #tpu.memory_space<vmem>>, vector<1x8x256xf32>
    %62 = vector.shape_cast %61 : vector<1x8x256xf32> to vector<8x256xf32>
    %cst_34 = arith.constant dense<0.000000e+00> : vector<8x256xf32>
    %63 = tpu.matmul %59, %3, %cst_34 {dimension_numbers = #tpu.dot_dimension_numbers<[1], [0], [0], [1], [0, 0, 1, 1], [], []>} : vector<8x128xf32>, vector<128x256xf32>, vector<8x256xf32> -> vector<8x256xf32>
    %64 = arith.addf %62, %63 : vector<8x256xf32>
    %65 = vector.extract_strided_slice %64 {offsets = [0, 0], sizes = [8, 128], strides = [1, 1]} : vector<8x256xf32> to vector<8x128xf32>
    %c10_i32 = arith.constant 10 : i32
    %66 = arith.index_cast %c10_i32 : i32 to index
    %c0_35 = arith.constant 0 : index
    %c0_36 = arith.constant 0 : index
    %67 = vector.load %arg2[%66, %c0_35, %c0_36] : memref<16x8x256xf32, #tpu.memory_space<vmem>>, vector<1x8x256xf32>
    %68 = vector.shape_cast %67 : vector<1x8x256xf32> to vector<8x256xf32>
    %cst_37 = arith.constant dense<0.000000e+00> : vector<8x256xf32>
    %69 = tpu.matmul %65, %3, %cst_37 {dimension_numbers = #tpu.dot_dimension_numbers<[1], [0], [0], [1], [0, 0, 1, 1], [], []>} : vector<8x128xf32>, vector<128x256xf32>, vector<8x256xf32> -> vector<8x256xf32>
    %70 = arith.addf %68, %69 : vector<8x256xf32>
    %71 = vector.extract_strided_slice %70 {offsets = [0, 0], sizes = [8, 128], strides = [1, 1]} : vector<8x256xf32> to vector<8x128xf32>
    %c11_i32 = arith.constant 11 : i32
    %72 = arith.index_cast %c11_i32 : i32 to index
    %c0_38 = arith.constant 0 : index
    %c0_39 = arith.constant 0 : index
    %73 = vector.load %arg2[%72, %c0_38, %c0_39] : memref<16x8x256xf32, #tpu.memory_space<vmem>>, vector<1x8x256xf32>
    %74 = vector.shape_cast %73 : vector<1x8x256xf32> to vector<8x256xf32>
    %cst_40 = arith.constant dense<0.000000e+00> : vector<8x256xf32>
    %75 = tpu.matmul %71, %3, %cst_40 {dimension_numbers = #tpu.dot_dimension_numbers<[1], [0], [0], [1], [0, 0, 1, 1], [], []>} : vector<8x128xf32>, vector<128x256xf32>, vector<8x256xf32> -> vector<8x256xf32>
    %76 = arith.addf %74, %75 : vector<8x256xf32>
    %77 = vector.extract_strided_slice %76 {offsets = [0, 0], sizes = [8, 128], strides = [1, 1]} : vector<8x256xf32> to vector<8x128xf32>
    %c12_i32 = arith.constant 12 : i32
    %78 = arith.index_cast %c12_i32 : i32 to index
    %c0_41 = arith.constant 0 : index
    %c0_42 = arith.constant 0 : index
    %79 = vector.load %arg2[%78, %c0_41, %c0_42] : memref<16x8x256xf32, #tpu.memory_space<vmem>>, vector<1x8x256xf32>
    %80 = vector.shape_cast %79 : vector<1x8x256xf32> to vector<8x256xf32>
    %cst_43 = arith.constant dense<0.000000e+00> : vector<8x256xf32>
    %81 = tpu.matmul %77, %3, %cst_43 {dimension_numbers = #tpu.dot_dimension_numbers<[1], [0], [0], [1], [0, 0, 1, 1], [], []>} : vector<8x128xf32>, vector<128x256xf32>, vector<8x256xf32> -> vector<8x256xf32>
    %82 = arith.addf %80, %81 : vector<8x256xf32>
    %83 = vector.extract_strided_slice %82 {offsets = [0, 0], sizes = [8, 128], strides = [1, 1]} : vector<8x256xf32> to vector<8x128xf32>
    %c13_i32 = arith.constant 13 : i32
    %84 = arith.index_cast %c13_i32 : i32 to index
    %c0_44 = arith.constant 0 : index
    %c0_45 = arith.constant 0 : index
    %85 = vector.load %arg2[%84, %c0_44, %c0_45] : memref<16x8x256xf32, #tpu.memory_space<vmem>>, vector<1x8x256xf32>
    %86 = vector.shape_cast %85 : vector<1x8x256xf32> to vector<8x256xf32>
    %cst_46 = arith.constant dense<0.000000e+00> : vector<8x256xf32>
    %87 = tpu.matmul %83, %3, %cst_46 {dimension_numbers = #tpu.dot_dimension_numbers<[1], [0], [0], [1], [0, 0, 1, 1], [], []>} : vector<8x128xf32>, vector<128x256xf32>, vector<8x256xf32> -> vector<8x256xf32>
    %88 = arith.addf %86, %87 : vector<8x256xf32>
    %89 = vector.extract_strided_slice %88 {offsets = [0, 0], sizes = [8, 128], strides = [1, 1]} : vector<8x256xf32> to vector<8x128xf32>
    %c14_i32 = arith.constant 14 : i32
    %90 = arith.index_cast %c14_i32 : i32 to index
    %c0_47 = arith.constant 0 : index
    %c0_48 = arith.constant 0 : index
    %91 = vector.load %arg2[%90, %c0_47, %c0_48] : memref<16x8x256xf32, #tpu.memory_space<vmem>>, vector<1x8x256xf32>
    %92 = vector.shape_cast %91 : vector<1x8x256xf32> to vector<8x256xf32>
    %cst_49 = arith.constant dense<0.000000e+00> : vector<8x256xf32>
    %93 = tpu.matmul %89, %3, %cst_49 {dimension_numbers = #tpu.dot_dimension_numbers<[1], [0], [0], [1], [0, 0, 1, 1], [], []>} : vector<8x128xf32>, vector<128x256xf32>, vector<8x256xf32> -> vector<8x256xf32>
    %94 = arith.addf %92, %93 : vector<8x256xf32>
    %95 = vector.extract_strided_slice %94 {offsets = [0, 0], sizes = [8, 128], strides = [1, 1]} : vector<8x256xf32> to vector<8x128xf32>
    %c15_i32 = arith.constant 15 : i32
    %96 = arith.index_cast %c15_i32 : i32 to index
    %c0_50 = arith.constant 0 : index
    %c0_51 = arith.constant 0 : index
    %97 = vector.load %arg2[%96, %c0_50, %c0_51] : memref<16x8x256xf32, #tpu.memory_space<vmem>>, vector<1x8x256xf32>
    %98 = vector.shape_cast %97 : vector<1x8x256xf32> to vector<8x256xf32>
    %cst_52 = arith.constant dense<0.000000e+00> : vector<8x256xf32>
    %99 = tpu.matmul %95, %3, %cst_52 {dimension_numbers = #tpu.dot_dimension_numbers<[1], [0], [0], [1], [0, 0, 1, 1], [], []>} : vector<8x128xf32>, vector<128x256xf32>, vector<8x256xf32> -> vector<8x256xf32>
    %100 = arith.addf %98, %99 : vector<8x256xf32>
    %101 = vector.extract_strided_slice %100 {offsets = [0, 0], sizes = [8, 128], strides = [1, 1]} : vector<8x256xf32> to vector<8x128xf32>
    %c16_i32 = arith.constant 16 : i32
    %c0_53 = arith.constant 0 : index
    %c0_54 = arith.constant 0 : index
    %102 = vector.load %arg7[%c0_53, %c0_54] : memref<8x128xf32, #tpu.memory_space<vmem>>, vector<8x128xf32>
    tpu.vector_store %arg7[%c0_53, %c0_54], %101 {strides = array<i32>} : memref<8x128xf32, #tpu.memory_space<vmem>>, vector<8x128xf32>,
    %c0_i32_55 = arith.constant 0 : i32
    %103 = arith.cmpi eq, %arg1, %c0_i32_55 : i32
    %104 = arith.extui %103 : i1 to i32
    %c0_i32_56 = arith.constant 0 : i32
    %105 = arith.cmpi ne, %104, %c0_i32_56 : i32
    scf.if %105 {
      %106 = vector.extract_strided_slice %100 {offsets = [0, 128], sizes = [8, 128], strides = [1, 1]} : vector<8x256xf32> to vector<8x128xf32>
      %cst_57 = arith.constant dense<0xFF800000> : vector<8xf32>
      %107 = vector.multi_reduction <maximumf>, %106, %cst_57 [1] : vector<8x128xf32> to vector<8xf32>
      %108 = vector.shape_cast %107 : vector<8xf32> to vector<8x1xf32>
      %109 = vector.broadcast %108 : vector<8x1xf32> to vector<8x128xf32>
      %110 = arith.subf %106, %109 : vector<8x128xf32>
      %111 = math.exp %110 : vector<8x128xf32>
      %cst_58 = arith.constant dense<0.000000e+00> : vector<8xf32>
      %112 = vector.multi_reduction <add>, %111, %cst_58 [1] : vector<8x128xf32> to vector<8xf32>
      %113 = vector.shape_cast %112 : vector<8xf32> to vector<8x1xf32>
      %114 = math.log %113 : vector<8x1xf32>
      %115 = vector.broadcast %114 : vector<8x1xf32> to vector<8x128xf32>
      %116 = arith.subf %110, %115 : vector<8x128xf32>
      %c0_59 = arith.constant 0 : index
      %c0_60 = arith.constant 0 : index
      %117 = vector.load %arg5[%c0_59, %c0_60] : memref<8x128xf32, #tpu.memory_space<vmem>>, vector<8x128xf32>
      tpu.vector_store %arg5[%c0_59, %c0_60], %116 {strides = array<i32>} : memref<8x128xf32, #tpu.memory_space<vmem>>, vector<8x128xf32>,
      %c0_61 = arith.constant 0 : index
      %c0_62 = arith.constant 0 : index
      %118 = vector.load %arg6[%c0_61, %c0_62] : memref<8x128xf32, #tpu.memory_space<vmem>>, vector<8x128xf32>
      tpu.vector_store %arg6[%c0_61, %c0_62], %101 {strides = array<i32>} : memref<8x128xf32, #tpu.memory_space<vmem>>, vector<8x128xf32>,
    } else {
    }
    return
  }
  func.func @transform_0(%arg0: i32, %arg1: i32) -> (i32, i32, i32) {
    %c0_i32 = arith.constant 0 : i32
    %c0_i32_0 = arith.constant 0 : i32
    return %arg1, %arg0, %c0_i32 : i32, i32, i32
  }
  func.func @transform_1(%arg0: i32, %arg1: i32) -> (i32, i32) {
    %c0_i32 = arith.constant 0 : i32
    %c0_i32_0 = arith.constant 0 : i32
    return %arg0, %c0_i32 : i32, i32
  }
  func.func @transform_2(%arg0: i32, %arg1: i32) -> (i32, i32) {
    %c0_i32 = arith.constant 0 : i32
    %c0_i32_0 = arith.constant 0 : i32
    %c0_i32_1 = arith.constant 0 : i32
    return %c0_i32, %c0_i32_0 : i32, i32
  }
  func.func @transform_3(%arg0: i32, %arg1: i32) -> (i32, i32) {
    %c0_i32 = arith.constant 0 : i32
    %c0_i32_0 = arith.constant 0 : i32
    return %arg0, %c0_i32 : i32, i32
  }
  func.func @transform_4(%arg0: i32, %arg1: i32) -> (i32, i32) {
    %c0_i32 = arith.constant 0 : i32
    %c0_i32_0 = arith.constant 0 : i32
    return %arg0, %c0_i32 : i32, i32
  }
}

</mosaic_0001>

<bundles_post_ra>
// kernel: tpu_custom_call.1
= control target key start
LH: loop header
LB: loop body
LE: loop exit
PB: predicated region body
PF: predicated region fallthrough
CT: control target
= control target key end

     0   :  { %10 = vsyncpa [#allocation4], 0  ;;  %s2358_s0 = inlined_call_operand.hbm [shape: f32[16,8,256], index: 0, kind: input, shape index: {}]   ;;  %s2359_s1 = inlined_call_operand.hbm [shape: f32[8,128], index: 1, kind: input, shape index: {}]   ;;  %s2360_s2 = inlined_call_operand.hbm [shape: f32[128,256], index: 2, kind: input, shape index: {}]   ;;  %s2361_s3 = inlined_call_operand.hbm [shape: f32[8,128], index: 3, kind: output, shape index: {0}]   ;;  %s2362_s4 = inlined_call_operand.hbm [shape: f32[8,128], index: 4, kind: output, shape index: {1}]  }
   0x1   :  { %11 = vsyncpa [#allocation7], 0 }
   0x2   :  { %12 = vsyncpa [#allocation5], 0 }
   0x3   :  { %13 = vsyncpa [#allocation11], 0  ;;  %s1954_s15 = smov [#allocation6]   ;;  %s1955_s17 = smov [#allocation3]  }
   0x4   :  { %s32_s16 = sshll.u32 %s1954_s15, 4  ;;  %s19_s18 = sshll.u32 %s1955_s17, 4  ;;  %s33_s16 = int_to_ptr.vmem [resolvable:$true] %s32_s16  ;;  %s1987_s18 = int_to_ptr.vmem [resolvable:$true] %s19_s18 }
   0x5   :  { %s1836_s21 = scalar_lea.hbm %s2359_s1, 128 }
   0x6   :  { %p1837_p0 = scmp.ne.s32.totalorder %s2359_s1, %s1836_s21  ;;  %p1840_p1 = scmp.lt.u32.totalorder %s1836_s21, %s2359_s1 }
   0x8   :  { %p1842_p2 = pnand %p1840_p1, %p1837_p0 }
   0xa   :  { %1845 = shalt.err (!%p1842_p2)
}
   0xb   :  { %s1846_s26 = scalar_lea.vmem %s33_s16, 128  ;;  %p1851_p4 = scmp.lt.s32.totalorder %s33_s16, %s33_s16 }
   0xc   :  { %p1847_p3 = scmp.ne.s32.totalorder %s33_s16, %s1846_s26  ;;  %p1852_p5 = scmp.lt.s32.totalorder %s1846_s26, %s1846_s26 }
   0xe   :  { %p1853_p6 = por %p1852_p5, %p1851_p4 }
  0x10   :  { %p1854_p7 = pnand %p1853_p6, %p1847_p3 }
  0x12   :  { %1857 = shalt.err (!%p1854_p7)
}
  0x13   :  { %35 = dma.hbm_to_vmem [thread:$0]  %s2359_s1, 128, %s33_s16, [#allocation7]  }
  0x14   :  { %s1858_s5 = scalar_lea.hbm %s2358_s0, 4096 }
  0x15   :  { %p1859_p8 = scmp.ne.s32.totalorder %s2358_s0, %s1858_s5  ;;  %p1862_p9 = scmp.lt.u32.totalorder %s1858_s5, %s2358_s0 }
  0x17   :  { %p1864_p10 = pnand %p1862_p9, %p1859_p8 }
  0x19   :  { %1867 = shalt.err (!%p1864_p10)
}
  0x1a   :  { %s1868_s10 = scalar_lea.vmem %s1987_s18, 4096  ;;  %p1873_p12 = scmp.lt.s32.totalorder %s1987_s18, %s1987_s18 }
  0x1b   :  { %p1869_p11 = scmp.ne.s32.totalorder %s1987_s18, %s1868_s10  ;;  %p1874_p13 = scmp.lt.s32.totalorder %s1868_s10, %s1868_s10 }
  0x1d   :  { %p1875_p0 = por %p1874_p13, %p1873_p12 }
  0x1f   :  { %p1876_p1 = pnand %p1875_p0, %p1869_p11 }
  0x21   :  { %1879 = shalt.err (!%p1876_p1)
}
  0x22   :  { %s1956_s1 = smov 256   ;;  %s1957_s11 = smov 16  }
  0x23   :  { %25 = dma.hbm_to_vmem [thread:$0]  %s2358_s0, 4096, %s1987_s18, [#allocation4], %s1956_s1, %s1956_s1, %s1957_s11  }
  0x24   :  { %s1958_s14 = smov [#allocation8]   ;;  %s1880_s19 = scalar_lea.hbm %s2360_s2, 4096 }
  0x25   :  { %s41_s15 = sshll.u32 %s1958_s14, 4  ;;  %p1881_p2 = scmp.ne.s32.totalorder %s2360_s2, %s1880_s19  ;;  %s42_s15 = int_to_ptr.vmem [resolvable:$true] %s41_s15 }
  0x26   :  { %p1884_p3 = scmp.lt.u32.totalorder %s1880_s19, %s2360_s2 }
  0x28   :  { %p1886_p4 = pnand %p1884_p3, %p1881_p2 }
  0x2a   :  { %1889 = shalt.err (!%p1886_p4)
}
  0x2b   :  { %s1890_s24 = scalar_lea.vmem %s42_s15, 4096  ;;  %p1895_p6 = scmp.lt.s32.totalorder %s42_s15, %s42_s15 }
  0x2c   :  { %p1891_p5 = scmp.ne.s32.totalorder %s42_s15, %s1890_s24  ;;  %p1896_p7 = scmp.lt.s32.totalorder %s1890_s24, %s1890_s24 }
  0x2e   :  { %p1897_p8 = por %p1896_p7, %p1895_p6 }
  0x30   :  { %p1898_p9 = pnand %p1897_p8, %p1891_p5 }
  0x32   :  { %1901 = shalt.err (!%p1898_p9)
}
  0x33   :  { %47 = dma.hbm_to_vmem [thread:$0]  %s2360_s2, 4096, %s42_s15, [#allocation7], %s1956_s1, %s1956_s1, %s1957_s11  }
  0x34   :  { %1946 = dma.done.wait [#allocation4], 4096  }
  0x35   :  { %1947 = vsyncadd [#allocation4], 4294963200 }
  0x36   :  { %1948 = dma.done.wait [#allocation7], 4224  }
  0x37   :  { %1949 = vsyncadd [#allocation7], 4294963072  ;;  %v1959_v0 = vmov 0.0   ;;  %v64_v1 = vld [vmem:[#allocation8 + $0x8] sm:$0xff]  ;;  %v66_v2 = vld [vmem:[#allocation8 + $0x18] sm:$0xff]  ;;  %s1960_s2 = smov [#allocation10]  }
  0x38   :  { %161 = vmatprep.mubr.f32.mxu0 %v1959_v0  ;;  %234 = vmatprep.mubr.f32.mxu1 %v1959_v0  ;;  %v63_v3 = vld [vmem:[#allocation8] sm:$0xff]  ;;  %v2032_v4 = vpack.c.bf16 %v66_v2, %v64_v1  ;;  %v65_v5 = vld [vmem:[#allocation8 + $0x10] sm:$0xff]  ;;  %v68_v6 = vld [vmem:[#allocation8 + $0x28] sm:$0xff]  ;;  %s1298_s25 = sshll.u32 %s1960_s2, 4  ;;  %s1299_s25 = int_to_ptr.vmem [resolvable:$true] %s1298_s25 }
  0x39   :  { %v70_v7 = vld [vmem:[#allocation8 + $0x38] sm:$0xff]  ;;  %v2034_v8 = vpack.c.bf16 %v65_v5, %v63_v3  ;;  %v67_v10 = vld [vmem:[#allocation8 + $0x20] sm:$0xff]  ;;  %v69_v11 = vld [vmem:[#allocation8 + $0x30] sm:$0xff]  ;;  %s1902_s26 = scalar_lea.vmem %s1299_s25, 128  ;;  %p1907_p11 = scmp.lt.s32.totalorder %s1299_s25, %s1299_s25 }
  0x3a   :  { %v2036_v9 = vpack.c.bf16 %v70_v7, %v68_v6  ;;  %v72_v12 = vld [vmem:[#allocation8 + $0x48] sm:$0xff]  ;;  %1313 = vmatprep.subr.bf16.mxu0 %v2032_v4  ;;  %v74_v13 = vld [vmem:[#allocation8 + $0x58] sm:$0xff]  ;;  %1345 = vmatprep.subr.bf16.mxu1 %v2032_v4  ;;  %v2041_v14 = vpack.c.bf16 %v69_v11, %v67_v10  ;;  %v71_v16 = vld [vmem:[#allocation8 + $0x40] sm:$0xff]  ;;  %p1903_p10 = scmp.ne.s32.totalorder %s1299_s25, %s1902_s26  ;;  %p1908_p12 = scmp.lt.s32.totalorder %s1902_s26, %s1902_s26 }
  0x3b   :  { %1315 = vmatpush1.bf16.msra.mxu0 %v2034_v8  ;;  %1347 = vmatpush1.bf16.msra.mxu1 %v2034_v8  ;;  %v2045_v15 = vpack.c.bf16 %v74_v13, %v72_v12  ;;  %v73_v17 = vld [vmem:[#allocation8 + $0x50] sm:$0xff]  ;;  %v76_v18 = vld [vmem:[#allocation8 + $0x68] sm:$0xff]  ;;  %v78_v19 = vld [vmem:[#allocation8 + $0x78] sm:$0xff] }
  0x3c   :  { %1317 = vmatprep.subr.bf16.mxu0 %v2036_v9  ;;  %1349 = vmatprep.subr.bf16.mxu1 %v2036_v9  ;;  %v2049_v20 = vpack.c.bf16 %v73_v17, %v71_v16  ;;  %v2053_v21 = vpack.c.bf16 %v78_v19, %v76_v18  ;;  %v75_v22 = vld [vmem:[#allocation8 + $0x60] sm:$0xff]  ;;  %v77_v23 = vld [vmem:[#allocation8 + $0x70] sm:$0xff]  ;;  %v80_v24 = vld [vmem:[#allocation8 + $0x88] sm:$0xff]  ;;  %p1909_p13 = por %p1908_p12, %p1907_p11 }
  0x3d   :  { %v82_v25 = vld [vmem:[#allocation8 + $0x98] sm:$0xff]  ;;  %v2057_v26 = vpack.c.bf16 %v77_v23, %v75_v22  ;;  %v79_v28 = vld [vmem:[#allocation8 + $0x80] sm:$0xff]  ;;  %v81_v29 = vld [vmem:[#allocation8 + $0x90] sm:$0xff] }
  0x3e   :  { %v2061_v27 = vpack.c.bf16 %v82_v25, %v80_v24  ;;  %v84_v30 = vld [vmem:[#allocation8 + $0xa8] sm:$0xff]  ;;  %v86_v31 = vld [vmem:[#allocation8 + $0xb8] sm:$0xff]  ;;  %v2065_v32 = vpack.c.bf16 %v81_v29, %v79_v28  ;;  %v83_v34 = vld [vmem:[#allocation8 + $0xa0] sm:$0xff]  ;;  %p1910_p0 = pnand %p1909_p13, %p1903_p10 }
  0x3f   :  { %1319 = vmatpush1.bf16.msra.mxu0 %v2041_v14  ;;  %1351 = vmatpush1.bf16.msra.mxu1 %v2041_v14  ;;  %v2069_v33 = vpack.c.bf16 %v86_v31, %v84_v30  ;;  %v85_v35 = vld [vmem:[#allocation8 + $0xb0] sm:$0xff]  ;;  %v88_v36 = vld [vmem:[#allocation8 + $0xc8] sm:$0xff]  ;;  %v90_v37 = vld [vmem:[#allocation8 + $0xd8] sm:$0xff] }
  0x40   :  { %1321 = vmatprep.subr.bf16.mxu0 %v2045_v15  ;;  %1353 = vmatprep.subr.bf16.mxu1 %v2045_v15  ;;  %v2073_v38 = vpack.c.bf16 %v85_v35, %v83_v34  ;;  %v2077_v39 = vpack.c.bf16 %v90_v37, %v88_v36  ;;  %v87_v40 = vld [vmem:[#allocation8 + $0xc0] sm:$0xff]  ;;  %v89_v41 = vld [vmem:[#allocation8 + $0xd0] sm:$0xff]  ;;  %v92_v42 = vld [vmem:[#allocation8 + $0xe8] sm:$0xff] }
  0x41   :  { %v94_v43 = vld [vmem:[#allocation8 + $0xf8] sm:$0xff]  ;;  %v2081_v44 = vpack.c.bf16 %v89_v41, %v87_v40  ;;  %v91_v46 = vld [vmem:[#allocation8 + $0xe0] sm:$0xff]  ;;  %v93_v47 = vld [vmem:[#allocation8 + $0xf0] sm:$0xff] }
  0x42   :  { %v2085_v45 = vpack.c.bf16 %v94_v43, %v92_v42  ;;  %v2089_v48 = vpack.c.bf16 %v93_v47, %v91_v46  ;;  %v61_v49 = vld [vmem:[#allocation6] sm:$0xff]  ;;  %v169_v54 = vld [vmem:[#allocation3 + $0x10] sm:$0xff] }
  0x43   :  { %1323 = vmatpush1.bf16.msra.mxu0 %v2049_v20  ;;  %1355 = vmatpush1.bf16.msra.mxu1 %v2049_v20  ;;  %v96_v50 = vld [vmem:[#allocation3] sm:$0xff]  ;;  %v315_v62 = vld [vmem:[#allocation3 + $0x30] sm:$0xff] }
  0x44   :  { %1325 = vmatprep.subr.bf16.mxu0 %v2053_v21  ;;  %1357 = vmatprep.subr.bf16.mxu1 %v2053_v21  ;;  %v242_v58 = vld [vmem:[#allocation3 + $0x20] sm:$0xff]  ;;  %v461_v10 = vld [vmem:[#allocation3 + $0x50] sm:$0xff] }
  0x45   :  { %v388_v3 = vld [vmem:[#allocation3 + $0x40] sm:$0xff]  ;;  %v607_v22 = vld [vmem:[#allocation3 + $0x70] sm:$0xff] }
  0x46   :  { %v534_v16 = vld [vmem:[#allocation3 + $0x60] sm:$0xff]  ;;  %v753_v34 = vld [vmem:[#allocation3 + $0x90] sm:$0xff] }
  0x47   :  { %1327 = vmatpush1.bf16.msra.mxu0 %v2057_v26  ;;  %1359 = vmatpush1.bf16.msra.mxu1 %v2057_v26  ;;  %v680_v28 = vld [vmem:[#allocation3 + $0x80] sm:$0xff]  ;;  %v899_v46 = vld [vmem:[#allocation3 + $0xb0] sm:$0xff] }
  0x48   :  { %1329 = vmatprep.subr.bf16.mxu0 %v2061_v27  ;;  %1361 = vmatprep.subr.bf16.mxu1 %v2061_v27  ;;  %v826_v40 = vld [vmem:[#allocation3 + $0xa0] sm:$0xff] }
  0x4b   :  { %1331 = vmatpush1.bf16.msra.mxu0 %v2065_v32  ;;  %1363 = vmatpush1.bf16.msra.mxu1 %v2065_v32 }
  0x4c   :  { %1333 = vmatprep.subr.bf16.mxu0 %v2069_v33  ;;  %1365 = vmatprep.subr.bf16.mxu1 %v2069_v33 }
  0x4f   :  { %1335 = vmatpush1.bf16.msra.mxu0 %v2073_v38  ;;  %1367 = vmatpush1.bf16.msra.mxu1 %v2073_v38 }
  0x50   :  { %1337 = vmatprep.subr.bf16.mxu0 %v2077_v39  ;;  %1369 = vmatprep.subr.bf16.mxu1 %v2077_v39 }
  0x53   :  { %1339 = vmatpush1.bf16.msra.mxu0 %v2081_v44  ;;  %1371 = vmatpush1.bf16.msra.mxu1 %v2081_v44 }
  0x54   :  { %1341 = vmatprep.subr.bf16.mxu0 %v2085_v45  ;;  %1373 = vmatprep.subr.bf16.mxu1 %v2085_v45 }
  0x57   :  { %1343 = vmatpush1.bf16.msra.mxu0 %v2089_v48  ;;  %1375 = vmatpush1.bf16.msra.mxu1 %v2089_v48 }
  0x58   :  { %1377 = vmatprep.subr.bf16.mxu0 %v2032_v4  ;;  %1409 = vmatprep.subr.bf16.mxu1 %v2032_v4 }
  0x5a   :  { %162 = vmatmul.mubr.f32.vlgmr.msra.gmra.mrb[0].mxu0 %v61_v49 }
  0x5b   :  { %1379 = vmatpush1.bf16.msra.mxu0 %v2034_v8  ;;  %307 = vmatprep.mubr.f32.mxu0 %v1959_v0 }
  0x5c   :  { %1381 = vmatprep.subr.bf16.mxu0 %v2036_v9 }
  0x5f   :  { %1383 = vmatpush1.bf16.msra.mxu0 %v2041_v14 }
  0x60   :  { %1385 = vmatprep.subr.bf16.mxu0 %v2045_v15 }
  0x63   :  { %1387 = vmatpush1.bf16.msra.mxu0 %v2049_v20 }
  0x64   :  { %1389 = vmatprep.subr.bf16.mxu0 %v2053_v21 }
  0x67   :  { %1391 = vmatpush1.bf16.msra.mxu0 %v2057_v26 }
  0x68   :  { %1393 = vmatprep.subr.bf16.mxu0 %v2061_v27 }
  0x6b   :  { %1395 = vmatpush1.bf16.msra.mxu0 %v2065_v32 }
  0x6c   :  { %1397 = vmatprep.subr.bf16.mxu0 %v2069_v33 }
  0x6f   :  { %1399 = vmatpush1.bf16.msra.mxu0 %v2073_v38 }
  0x70   :  { %1401 = vmatprep.subr.bf16.mxu0 %v2077_v39 }
  0x73   :  { %1403 = vmatpush1.bf16.msra.mxu0 %v2081_v44 }
  0x74   :  { %1405 = vmatprep.subr.bf16.mxu0 %v2085_v45 }
  0x77   :  { %1407 = vmatpush1.bf16.msra.mxu0 %v2089_v48 }
  0x78   :  { %1441 = vmatprep.subr.bf16.mxu0 %v2032_v4 }
 0x12d   :  { %v163_v51 = vpop.f32.mrb[0].mxu0 }
 0x12e   :  { %v167_v52 = vadd.f32 %v163_v51, %v96_v50  ;;  %v165_v53 = vpop.f32.mrb[1].mxu0 }
 0x130   :  { %235 = vmatmul.mubr.f32.vlgmr.msra.gmra.mrb[0].mxu1 %v167_v52 }
 0x131   :  { %1411 = vmatpush1.bf16.msra.mxu1 %v2034_v8  ;;  %380 = vmatprep.mubr.f32.mxu1 %v1959_v0 }
 0x132   :  { %1413 = vmatprep.subr.bf16.mxu1 %v2036_v9 }
 0x135   :  { %1415 = vmatpush1.bf16.msra.mxu1 %v2041_v14 }
 0x136   :  { %1417 = vmatprep.subr.bf16.mxu1 %v2045_v15 }
 0x139   :  { %1419 = vmatpush1.bf16.msra.mxu1 %v2049_v20 }
 0x13a   :  { %1421 = vmatprep.subr.bf16.mxu1 %v2053_v21 }
 0x13d   :  { %1423 = vmatpush1.bf16.msra.mxu1 %v2057_v26 }
 0x13e   :  { %1425 = vmatprep.subr.bf16.mxu1 %v2061_v27 }
 0x141   :  { %1427 = vmatpush1.bf16.msra.mxu1 %v2065_v32 }
 0x142   :  { %1429 = vmatprep.subr.bf16.mxu1 %v2069_v33 }
 0x145   :  { %1431 = vmatpush1.bf16.msra.mxu1 %v2073_v38 }
 0x146   :  { %1433 = vmatprep.subr.bf16.mxu1 %v2077_v39 }
 0x149   :  { %1435 = vmatpush1.bf16.msra.mxu1 %v2081_v44 }
 0x14a   :  { %1437 = vmatprep.subr.bf16.mxu1 %v2085_v45 }
 0x14d   :  { %1439 = vmatpush1.bf16.msra.mxu1 %v2089_v48 }
 0x14e   :  { %1473 = vmatprep.subr.bf16.mxu1 %v2032_v4 }
 0x203   :  { %v236_v55 = vpop.f32.mrb[0].mxu1 }
 0x204   :  { %v240_v56 = vadd.f32 %v236_v55, %v169_v54  ;;  %v238_v57 = vpop.f32.mrb[1].mxu1 }
 0x206   :  { %308 = vmatmul.mubr.f32.vlgmr.msra.gmra.mrb[2].mxu0 %v240_v56 }
 0x207   :  { %1443 = vmatpush1.bf16.msra.mxu0 %v2034_v8  ;;  %453 = vmatprep.mubr.f32.mxu0 %v1959_v0 }
 0x208   :  { %1445 = vmatprep.subr.bf16.mxu0 %v2036_v9 }
 0x20b   :  { %1447 = vmatpush1.bf16.msra.mxu0 %v2041_v14 }
 0x20c   :  { %1449 = vmatprep.subr.bf16.mxu0 %v2045_v15 }
 0x20f   :  { %1451 = vmatpush1.bf16.msra.mxu0 %v2049_v20 }
 0x210   :  { %1453 = vmatprep.subr.bf16.mxu0 %v2053_v21 }
 0x213   :  { %1455 = vmatpush1.bf16.msra.mxu0 %v2057_v26 }
 0x214   :  { %1457 = vmatprep.subr.bf16.mxu0 %v2061_v27 }
 0x217   :  { %1459 = vmatpush1.bf16.msra.mxu0 %v2065_v32 }
 0x218   :  { %1461 = vmatprep.subr.bf16.mxu0 %v2069_v33 }
 0x21b   :  { %1463 = vmatpush1.bf16.msra.mxu0 %v2073_v38 }
 0x21c   :  { %1465 = vmatprep.subr.bf16.mxu0 %v2077_v39 }
 0x21f   :  { %1467 = vmatpush1.bf16.msra.mxu0 %v2081_v44 }
 0x220   :  { %1469 = vmatprep.subr.bf16.mxu0 %v2085_v45 }
 0x223   :  { %1471 = vmatpush1.bf16.msra.mxu0 %v2089_v48 }
 0x224   :  { %1505 = vmatprep.subr.bf16.mxu0 %v2032_v4 }
 0x2d9   :  { %v309_v59 = vpop.f32.mrb[2].mxu0 }
 0x2da   :  { %v313_v60 = vadd.f32 %v309_v59, %v242_v58  ;;  %v311_v61 = vpop.f32.mrb[3].mxu0 }
 0x2dc   :  { %381 = vmatmul.mubr.f32.vlgmr.msra.gmra.mrb[2].mxu1 %v313_v60 }
 0x2dd   :  { %1475 = vmatpush1.bf16.msra.mxu1 %v2034_v8  ;;  %526 = vmatprep.mubr.f32.mxu1 %v1959_v0 }
 0x2de   :  { %1477 = vmatprep.subr.bf16.mxu1 %v2036_v9 }
 0x2e1   :  { %1479 = vmatpush1.bf16.msra.mxu1 %v2041_v14 }
 0x2e2   :  { %1481 = vmatprep.subr.bf16.mxu1 %v2045_v15 }
 0x2e5   :  { %1483 = vmatpush1.bf16.msra.mxu1 %v2049_v20 }
 0x2e6   :  { %1485 = vmatprep.subr.bf16.mxu1 %v2053_v21 }
 0x2e9   :  { %1487 = vmatpush1.bf16.msra.mxu1 %v2057_v26 }
 0x2ea   :  { %1489 = vmatprep.subr.bf16.mxu1 %v2061_v27 }
 0x2ed   :  { %1491 = vmatpush1.bf16.msra.mxu1 %v2065_v32 }
 0x2ee   :  { %1493 = vmatprep.subr.bf16.mxu1 %v2069_v33 }
 0x2f1   :  { %1495 = vmatpush1.bf16.msra.mxu1 %v2073_v38 }
 0x2f2   :  { %1497 = vmatprep.subr.bf16.mxu1 %v2077_v39 }
 0x2f5   :  { %1499 = vmatpush1.bf16.msra.mxu1 %v2081_v44 }
 0x2f6   :  { %1501 = vmatprep.subr.bf16.mxu1 %v2085_v45 }
 0x2f9   :  { %1503 = vmatpush1.bf16.msra.mxu1 %v2089_v48 }
 0x2fa   :  { %1537 = vmatprep.subr.bf16.mxu1 %v2032_v4 }
 0x3af   :  { %v382_v63 = vpop.f32.mrb[2].mxu1 }
 0x3b0   :  { %v386_v1 = vadd.f32 %v382_v63, %v315_v62  ;;  %v384_v2 = vpop.f32.mrb[3].mxu1 }
 0x3b2   :  { %454 = vmatmul.mubr.f32.vlgmr.msra.gmra.mrb[4].mxu0 %v386_v1 }
 0x3b3   :  { %1507 = vmatpush1.bf16.msra.mxu0 %v2034_v8  ;;  %599 = vmatprep.mubr.f32.mxu0 %v1959_v0 }
 0x3b4   :  { %1509 = vmatprep.subr.bf16.mxu0 %v2036_v9 }
 0x3b7   :  { %1511 = vmatpush1.bf16.msra.mxu0 %v2041_v14 }
 0x3b8   :  { %1513 = vmatprep.subr.bf16.mxu0 %v2045_v15 }
 0x3bb   :  { %1515 = vmatpush1.bf16.msra.mxu0 %v2049_v20 }
 0x3bc   :  { %1517 = vmatprep.subr.bf16.mxu0 %v2053_v21 }
 0x3bf   :  { %1519 = vmatpush1.bf16.msra.mxu0 %v2057_v26 }
 0x3c0   :  { %1521 = vmatprep.subr.bf16.mxu0 %v2061_v27 }
 0x3c3   :  { %1523 = vmatpush1.bf16.msra.mxu0 %v2065_v32 }
 0x3c4   :  { %1525 = vmatprep.subr.bf16.mxu0 %v2069_v33 }
 0x3c7   :  { %1527 = vmatpush1.bf16.msra.mxu0 %v2073_v38 }
 0x3c8   :  { %1529 = vmatprep.subr.bf16.mxu0 %v2077_v39 }
 0x3cb   :  { %1531 = vmatpush1.bf16.msra.mxu0 %v2081_v44 }
 0x3cc   :  { %1533 = vmatprep.subr.bf16.mxu0 %v2085_v45 }
 0x3cf   :  { %1535 = vmatpush1.bf16.msra.mxu0 %v2089_v48 }
 0x3d0   :  { %1569 = vmatprep.subr.bf16.mxu0 %v2032_v4 }
 0x485   :  { %v455_v5 = vpop.f32.mrb[4].mxu0 }
 0x486   :  { %v459_v6 = vadd.f32 %v455_v5, %v388_v3  ;;  %v457_v7 = vpop.f32.mrb[5].mxu0 }
 0x488   :  { %527 = vmatmul.mubr.f32.vlgmr.msra.gmra.mrb[4].mxu1 %v459_v6 }
 0x489   :  { %1539 = vmatpush1.bf16.msra.mxu1 %v2034_v8  ;;  %672 = vmatprep.mubr.f32.mxu1 %v1959_v0 }
 0x48a   :  { %1541 = vmatprep.subr.bf16.mxu1 %v2036_v9 }
 0x48d   :  { %1543 = vmatpush1.bf16.msra.mxu1 %v2041_v14 }
 0x48e   :  { %1545 = vmatprep.subr.bf16.mxu1 %v2045_v15 }
 0x491   :  { %1547 = vmatpush1.bf16.msra.mxu1 %v2049_v20 }
 0x492   :  { %1549 = vmatprep.subr.bf16.mxu1 %v2053_v21 }
 0x495   :  { %1551 = vmatpush1.bf16.msra.mxu1 %v2057_v26 }
 0x496   :  { %1553 = vmatprep.subr.bf16.mxu1 %v2061_v27 }
 0x499   :  { %1555 = vmatpush1.bf16.msra.mxu1 %v2065_v32 }
 0x49a   :  { %1557 = vmatprep.subr.bf16.mxu1 %v2069_v33 }
 0x49d   :  { %1559 = vmatpush1.bf16.msra.mxu1 %v2073_v38 }
 0x49e   :  { %1561 = vmatprep.subr.bf16.mxu1 %v2077_v39 }
 0x4a1   :  { %1563 = vmatpush1.bf16.msra.mxu1 %v2081_v44 }
 0x4a2   :  { %1565 = vmatprep.subr.bf16.mxu1 %v2085_v45 }
 0x4a5   :  { %1567 = vmatpush1.bf16.msra.mxu1 %v2089_v48 }
 0x4a6   :  { %1601 = vmatprep.subr.bf16.mxu1 %v2032_v4 }
 0x55b   :  { %v528_v11 = vpop.f32.mrb[4].mxu1 }
 0x55c   :  { %v532_v12 = vadd.f32 %v528_v11, %v461_v10  ;;  %v530_v13 = vpop.f32.mrb[5].mxu1 }
 0x55e   :  { %600 = vmatmul.mubr.f32.vlgmr.msra.gmra.mrb[6].mxu0 %v532_v12 }
 0x55f   :  { %1571 = vmatpush1.bf16.msra.mxu0 %v2034_v8  ;;  %745 = vmatprep.mubr.f32.mxu0 %v1959_v0 }
 0x560   :  { %1573 = vmatprep.subr.bf16.mxu0 %v2036_v9 }
 0x563   :  { %1575 = vmatpush1.bf16.msra.mxu0 %v2041_v14 }
 0x564   :  { %1577 = vmatprep.subr.bf16.mxu0 %v2045_v15 }
 0x567   :  { %1579 = vmatpush1.bf16.msra.mxu0 %v2049_v20 }
 0x568   :  { %1581 = vmatprep.subr.bf16.mxu0 %v2053_v21 }
 0x56b   :  { %1583 = vmatpush1.bf16.msra.mxu0 %v2057_v26 }
 0x56c   :  { %1585 = vmatprep.subr.bf16.mxu0 %v2061_v27 }
 0x56f   :  { %1587 = vmatpush1.bf16.msra.mxu0 %v2065_v32 }
 0x570   :  { %1589 = vmatprep.subr.bf16.mxu0 %v2069_v33 }
 0x573   :  { %1591 = vmatpush1.bf16.msra.mxu0 %v2073_v38 }
 0x574   :  { %1593 = vmatprep.subr.bf16.mxu0 %v2077_v39 }
 0x577   :  { %1595 = vmatpush1.bf16.msra.mxu0 %v2081_v44 }
 0x578   :  { %1597 = vmatprep.subr.bf16.mxu0 %v2085_v45 }
 0x57b   :  { %1599 = vmatpush1.bf16.msra.mxu0 %v2089_v48 }
 0x57c   :  { %1633 = vmatprep.subr.bf16.mxu0 %v2032_v4 }
 0x631   :  { %v601_v17 = vpop.f32.mrb[6].mxu0 }
 0x632   :  { %v605_v18 = vadd.f32 %v601_v17, %v534_v16  ;;  %v603_v19 = vpop.f32.mrb[7].mxu0 }
 0x634   :  { %673 = vmatmul.mubr.f32.vlgmr.msra.gmra.mrb[6].mxu1 %v605_v18 }
 0x635   :  { %1603 = vmatpush1.bf16.msra.mxu1 %v2034_v8  ;;  %818 = vmatprep.mubr.f32.mxu1 %v1959_v0 }
 0x636   :  { %1605 = vmatprep.subr.bf16.mxu1 %v2036_v9 }
 0x639   :  { %1607 = vmatpush1.bf16.msra.mxu1 %v2041_v14 }
 0x63a   :  { %1609 = vmatprep.subr.bf16.mxu1 %v2045_v15 }
 0x63d   :  { %1611 = vmatpush1.bf16.msra.mxu1 %v2049_v20 }
 0x63e   :  { %1613 = vmatprep.subr.bf16.mxu1 %v2053_v21 }
 0x641   :  { %1615 = vmatpush1.bf16.msra.mxu1 %v2057_v26 }
 0x642   :  { %1617 = vmatprep.subr.bf16.mxu1 %v2061_v27 }
 0x645   :  { %1619 = vmatpush1.bf16.msra.mxu1 %v2065_v32 }
 0x646   :  { %1621 = vmatprep.subr.bf16.mxu1 %v2069_v33 }
 0x649   :  { %1623 = vmatpush1.bf16.msra.mxu1 %v2073_v38 }
 0x64a   :  { %1625 = vmatprep.subr.bf16.mxu1 %v2077_v39 }
 0x64d   :  { %1627 = vmatpush1.bf16.msra.mxu1 %v2081_v44 }
 0x64e   :  { %1629 = vmatprep.subr.bf16.mxu1 %v2085_v45 }
 0x651   :  { %1631 = vmatpush1.bf16.msra.mxu1 %v2089_v48 }
 0x652   :  { %1665 = vmatprep.subr.bf16.mxu1 %v2032_v4 }
 0x707   :  { %v674_v23 = vpop.f32.mrb[6].mxu1 }
 0x708   :  { %v678_v24 = vadd.f32 %v674_v23, %v607_v22  ;;  %v676_v25 = vpop.f32.mrb[7].mxu1 }
 0x70a   :  { %746 = vmatmul.mubr.f32.vlgmr.msra.gmra.mrb[8].mxu0 %v678_v24 }
 0x70b   :  { %1635 = vmatpush1.bf16.msra.mxu0 %v2034_v8  ;;  %891 = vmatprep.mubr.f32.mxu0 %v1959_v0 }
 0x70c   :  { %1637 = vmatprep.subr.bf16.mxu0 %v2036_v9 }
 0x70f   :  { %1639 = vmatpush1.bf16.msra.mxu0 %v2041_v14 }
 0x710   :  { %1641 = vmatprep.subr.bf16.mxu0 %v2045_v15 }
 0x713   :  { %1643 = vmatpush1.bf16.msra.mxu0 %v2049_v20 }
 0x714   :  { %1645 = vmatprep.subr.bf16.mxu0 %v2053_v21 }
 0x717   :  { %1647 = vmatpush1.bf16.msra.mxu0 %v2057_v26 }
 0x718   :  { %1649 = vmatprep.subr.bf16.mxu0 %v2061_v27 }
 0x71b   :  { %1651 = vmatpush1.bf16.msra.mxu0 %v2065_v32 }
 0x71c   :  { %1653 = vmatprep.subr.bf16.mxu0 %v2069_v33 }
 0x71f   :  { %1655 = vmatpush1.bf16.msra.mxu0 %v2073_v38 }
 0x720   :  { %1657 = vmatprep.subr.bf16.mxu0 %v2077_v39 }
 0x723   :  { %1659 = vmatpush1.bf16.msra.mxu0 %v2081_v44 }
 0x724   :  { %1661 = vmatprep.subr.bf16.mxu0 %v2085_v45 }
 0x727   :  { %1663 = vmatpush1.bf16.msra.mxu0 %v2089_v48 }
 0x728   :  { %1697 = vmatprep.subr.bf16.mxu0 %v2032_v4 }
 0x7dd   :  { %v747_v29 = vpop.f32.mrb[8].mxu0 }
 0x7de   :  { %v751_v30 = vadd.f32 %v747_v29, %v680_v28  ;;  %v749_v31 = vpop.f32.mrb[9].mxu0 }
 0x7e0   :  { %819 = vmatmul.mubr.f32.vlgmr.msra.gmra.mrb[8].mxu1 %v751_v30 }
 0x7e1   :  { %1667 = vmatpush1.bf16.msra.mxu1 %v2034_v8  ;;  %964 = vmatprep.mubr.f32.mxu1 %v1959_v0 }
 0x7e2   :  { %1669 = vmatprep.subr.bf16.mxu1 %v2036_v9 }
 0x7e5   :  { %1671 = vmatpush1.bf16.msra.mxu1 %v2041_v14 }
 0x7e6   :  { %1673 = vmatprep.subr.bf16.mxu1 %v2045_v15 }
 0x7e9   :  { %1675 = vmatpush1.bf16.msra.mxu1 %v2049_v20 }
 0x7ea   :  { %1677 = vmatprep.subr.bf16.mxu1 %v2053_v21 }
 0x7ed   :  { %1679 = vmatpush1.bf16.msra.mxu1 %v2057_v26 }
 0x7ee   :  { %1681 = vmatprep.subr.bf16.mxu1 %v2061_v27 }
 0x7f1   :  { %1683 = vmatpush1.bf16.msra.mxu1 %v2065_v32 }
 0x7f2   :  { %1685 = vmatprep.subr.bf16.mxu1 %v2069_v33 }
 0x7f5   :  { %1687 = vmatpush1.bf16.msra.mxu1 %v2073_v38 }
 0x7f6   :  { %1689 = vmatprep.subr.bf16.mxu1 %v2077_v39 }
 0x7f9   :  { %1691 = vmatpush1.bf16.msra.mxu1 %v2081_v44 }
 0x7fa   :  { %1693 = vmatprep.subr.bf16.mxu1 %v2085_v45 }
 0x7fd   :  { %1695 = vmatpush1.bf16.msra.mxu1 %v2089_v48 }
 0x7fe   :  { %1729 = vmatprep.subr.bf16.mxu1 %v2032_v4 }
 0x8b3   :  { %v820_v35 = vpop.f32.mrb[8].mxu1 }
 0x8b4   :  { %v824_v36 = vadd.f32 %v820_v35, %v753_v34  ;;  %v822_v37 = vpop.f32.mrb[9].mxu1 }
 0x8b6   :  { %892 = vmatmul.mubr.f32.vlgmr.msra.gmra.mrb[10].mxu0 %v824_v36 }
 0x8b7   :  { %1699 = vmatpush1.bf16.msra.mxu0 %v2034_v8  ;;  %1037 = vmatprep.mubr.f32.mxu0 %v1959_v0 }
 0x8b8   :  { %1701 = vmatprep.subr.bf16.mxu0 %v2036_v9 }
 0x8bb   :  { %1703 = vmatpush1.bf16.msra.mxu0 %v2041_v14 }
 0x8bc   :  { %1705 = vmatprep.subr.bf16.mxu0 %v2045_v15 }
 0x8bf   :  { %1707 = vmatpush1.bf16.msra.mxu0 %v2049_v20 }
 0x8c0   :  { %1709 = vmatprep.subr.bf16.mxu0 %v2053_v21 }
 0x8c3   :  { %1711 = vmatpush1.bf16.msra.mxu0 %v2057_v26 }
 0x8c4   :  { %1713 = vmatprep.subr.bf16.mxu0 %v2061_v27 }
 0x8c7   :  { %1715 = vmatpush1.bf16.msra.mxu0 %v2065_v32 }
 0x8c8   :  { %1717 = vmatprep.subr.bf16.mxu0 %v2069_v33 }
 0x8cb   :  { %1719 = vmatpush1.bf16.msra.mxu0 %v2073_v38 }
 0x8cc   :  { %1721 = vmatprep.subr.bf16.mxu0 %v2077_v39 }
 0x8cf   :  { %1723 = vmatpush1.bf16.msra.mxu0 %v2081_v44 }
 0x8d0   :  { %1725 = vmatprep.subr.bf16.mxu0 %v2085_v45 }
 0x8d3   :  { %1727 = vmatpush1.bf16.msra.mxu0 %v2089_v48 }
 0x8d4   :  { %1761 = vmatprep.subr.bf16.mxu0 %v2032_v4 }
 0x989   :  { %v893_v41 = vpop.f32.mrb[10].mxu0 }
 0x98a   :  { %v897_v42 = vadd.f32 %v893_v41, %v826_v40  ;;  %v895_v43 = vpop.f32.mrb[11].mxu0 }
 0x98c   :  { %965 = vmatmul.mubr.f32.vlgmr.msra.gmra.mrb[10].mxu1 %v897_v42 }
 0x98d   :  { %1731 = vmatpush1.bf16.msra.mxu1 %v2034_v8  ;;  %1110 = vmatprep.mubr.f32.mxu1 %v1959_v0 }
 0x98e   :  { %1733 = vmatprep.subr.bf16.mxu1 %v2036_v9 }
 0x991   :  { %1735 = vmatpush1.bf16.msra.mxu1 %v2041_v14 }
 0x992   :  { %1737 = vmatprep.subr.bf16.mxu1 %v2045_v15 }
 0x995   :  { %1739 = vmatpush1.bf16.msra.mxu1 %v2049_v20 }
 0x996   :  { %1741 = vmatprep.subr.bf16.mxu1 %v2053_v21 }
 0x999   :  { %1743 = vmatpush1.bf16.msra.mxu1 %v2057_v26 }
 0x99a   :  { %1745 = vmatprep.subr.bf16.mxu1 %v2061_v27 }
 0x99d   :  { %1747 = vmatpush1.bf16.msra.mxu1 %v2065_v32 }
 0x99e   :  { %1749 = vmatprep.subr.bf16.mxu1 %v2069_v33 }
 0x9a1   :  { %1751 = vmatpush1.bf16.msra.mxu1 %v2073_v38 }
 0x9a2   :  { %1753 = vmatprep.subr.bf16.mxu1 %v2077_v39 }
 0x9a5   :  { %1755 = vmatpush1.bf16.msra.mxu1 %v2081_v44 }
 0x9a6   :  { %1757 = vmatprep.subr.bf16.mxu1 %v2085_v45 }
 0x9a9   :  { %1759 = vmatpush1.bf16.msra.mxu1 %v2089_v48 }
 0x9aa   :  { %1793 = vmatprep.subr.bf16.mxu1 %v2032_v4  ;;  %v972_v4 = vld [vmem:[#allocation3 + $0xc0] sm:$0xff] }
 0xa5f   :  { %v966_v47 = vpop.f32.mrb[10].mxu1 }
 0xa60   :  { %v970_v49 = vadd.f32 %v966_v47, %v899_v46  ;;  %v968_v50 = vpop.f32.mrb[11].mxu1 }
 0xa62   :  { %1038 = vmatmul.mubr.f32.vlgmr.msra.gmra.mrb[12].mxu0 %v970_v49 }
 0xa63   :  { %1763 = vmatpush1.bf16.msra.mxu0 %v2034_v8  ;;  %1183 = vmatprep.mubr.f32.mxu0 %v1959_v0 }
 0xa64   :  { %1765 = vmatprep.subr.bf16.mxu0 %v2036_v9 }
 0xa67   :  { %1767 = vmatpush1.bf16.msra.mxu0 %v2041_v14 }
 0xa68   :  { %1769 = vmatprep.subr.bf16.mxu0 %v2045_v15 }
 0xa6b   :  { %1771 = vmatpush1.bf16.msra.mxu0 %v2049_v20 }
 0xa6c   :  { %1773 = vmatprep.subr.bf16.mxu0 %v2053_v21 }
 0xa6f   :  { %1775 = vmatpush1.bf16.msra.mxu0 %v2057_v26 }
 0xa70   :  { %1777 = vmatprep.subr.bf16.mxu0 %v2061_v27 }
 0xa73   :  { %1779 = vmatpush1.bf16.msra.mxu0 %v2065_v32 }
 0xa74   :  { %1781 = vmatprep.subr.bf16.mxu0 %v2069_v33 }
 0xa77   :  { %1783 = vmatpush1.bf16.msra.mxu0 %v2073_v38 }
 0xa78   :  { %1785 = vmatprep.subr.bf16.mxu0 %v2077_v39 }
 0xa7b   :  { %1787 = vmatpush1.bf16.msra.mxu0 %v2081_v44 }
 0xa7c   :  { %1789 = vmatprep.subr.bf16.mxu0 %v2085_v45 }
 0xa7f   :  { %1791 = vmatpush1.bf16.msra.mxu0 %v2089_v48 }
 0xb35   :  { %v1039_v51 = vpop.f32.mrb[12].mxu0 }
 0xb36   :  { %v1043_v52 = vadd.f32 %v1039_v51, %v972_v4  ;;  %v1041_v53 = vpop.f32.mrb[13].mxu0 }
 0xb38   :  { %1111 = vmatmul.mubr.f32.vlgmr.msra.gmra.mrb[12].mxu1 %v1043_v52 }
 0xb39   :  { %1795 = vmatpush1.bf16.msra.mxu1 %v2034_v8  ;;  %1257 = vmatprep.mubr.f32.mxu1 %v1959_v0  ;;  %v1045_v0 = vld [vmem:[#allocation3 + $0xd0] sm:$0xff] }
 0xb3a   :  { %1797 = vmatprep.subr.bf16.mxu1 %v2036_v9 }
 0xb3d   :  { %1799 = vmatpush1.bf16.msra.mxu1 %v2041_v14 }
 0xb3e   :  { %1801 = vmatprep.subr.bf16.mxu1 %v2045_v15  ;;  %v1118_v15 = vld [vmem:[#allocation3 + $0xe0] sm:$0xff] }
 0xb41   :  { %1803 = vmatpush1.bf16.msra.mxu1 %v2049_v20 }
 0xb42   :  { %1805 = vmatprep.subr.bf16.mxu1 %v2053_v21 }
 0xb45   :  { %1807 = vmatpush1.bf16.msra.mxu1 %v2057_v26 }
 0xb46   :  { %1809 = vmatprep.subr.bf16.mxu1 %v2061_v27  ;;  %v1191_v27 = vld [vmem:[#allocation3 + $0xf0] sm:$0xff] }
 0xb49   :  { %1811 = vmatpush1.bf16.msra.mxu1 %v2065_v32  ;;  %v1192_v32 = vld [vmem:[#allocation3 + $0xf8] sm:$0xff] }
 0xb4a   :  { %1813 = vmatprep.subr.bf16.mxu1 %v2069_v33 }
 0xb4d   :  { %1815 = vmatpush1.bf16.msra.mxu1 %v2073_v38 }
 0xb4e   :  { %1817 = vmatprep.subr.bf16.mxu1 %v2077_v39 }
 0xb51   :  { %1819 = vmatpush1.bf16.msra.mxu1 %v2081_v44 }
 0xb52   :  { %1821 = vmatprep.subr.bf16.mxu1 %v2085_v45 }
 0xb55   :  { %1823 = vmatpush1.bf16.msra.mxu1 %v2089_v48 }
 0xc0b   :  { %v1112_v8 = vpop.f32.mrb[12].mxu1 }
 0xc0c   :  { %v1116_v9 = vadd.f32 %v1112_v8, %v1045_v0  ;;  %v1114_v14 = vpop.f32.mrb[13].mxu1 }
 0xc0e   :  { %1184 = vmatmul.mubr.f32.vlgmr.msra.gmra.mrb[14].mxu0 %v1116_v9 }
 0xce1   :  { %v1185_v20 = vpop.f32.mrb[14].mxu0 }
 0xce2   :  { %v1189_v21 = vadd.f32 %v1185_v20, %v1118_v15  ;;  %v1187_v26 = vpop.f32.mrb[15].mxu0 }
 0xce4   :  { %1258 = vmatmul.mubr.f32.vlgmr.msra.gmra.mrb[14].mxu1 %v1189_v21 }
 0xdb7   :  { %v1259_v33 = vpop.f32.mrb[14].mxu1 }
 0xdb8   :  { %v1264_v38 = vadd.f32 %v1259_v33, %v1191_v27  ;;  %v1261_v39 = vpop.f32.mrb[15].mxu1 }
 0xdb9   :  { %v1265_v44 = vadd.f32 %v1261_v39, %v1192_v32 }
 0xdba   :  { %1281 = vst [vmem:[#allocation10] sm:$0xff] %v1264_v38 }
 0xdbb   :  { %1270 = vmax.xlane.f32.xlu0 %v1265_v44 }
 0xe48   :  { %v1271_v45 = vpop.xlane.xlu0 %1270 }
 0xe49   :  { %v1272_v48 = vsub.f32 %v1265_v44, %v1271_v45 }
 0xe4b   :  { %v1273_v54 = vmul.f32 1.442695, %v1272_v48 }
 0xe4d   :  { %1832 = vpow2.f32 %v1273_v54 }
 0xe57   :  { %v1833_v55 = vpop.eup %1832 }
 0xe58   :  { %1275 = vadd.xlane.f32.xlu0 %v1833_v55 }
 0xe59   :  { %1913 = shalt.err (!%p1910_p0)
}
 0xe5a   :  { %s1914_s29 = scalar_lea.hbm %s2362_s4, 128 }
 0xe5b   :  { %p1915_p1 = scmp.ne.s32.totalorder %s2362_s4, %s1914_s29  ;;  %p1918_p2 = scmp.lt.u32.totalorder %s1914_s29, %s2362_s4 }
 0xe5d   :  { %p1920_p3 = pnand %p1918_p2, %p1915_p1 }
 0xe5f   :  { %1923 = shalt.err (!%p1920_p3)
}
 0xe60   :  { %1301 = dma.vmem_to_hbm [thread:$0]  %s1299_s25, 128, %s2362_s4, [#allocation11]  }
 0xe61   :  { %s1961_s10 = smov [#allocation9]  }
 0xe62   :  { %s1288_s1 = sshll.u32 %s1961_s10, 4  ;;  %s1289_s1 = int_to_ptr.vmem [resolvable:$true] %s1288_s1 }
 0xe63   :  { %s1924_s11 = scalar_lea.vmem %s1289_s1, 128  ;;  %p1929_p5 = scmp.lt.s32.totalorder %s1289_s1, %s1289_s1 }
 0xe64   :  { %p1925_p4 = scmp.ne.s32.totalorder %s1289_s1, %s1924_s11  ;;  %p1930_p6 = scmp.lt.s32.totalorder %s1924_s11, %s1924_s11 }
 0xe66   :  { %p1931_p7 = por %p1930_p6, %p1929_p5 }
 0xe68   :  { %p1932_p8 = pnand %p1931_p7, %p1925_p4 }
 0xee5   :  { %v1276_v56 = vpop.xlane.xlu0 %1275 }
 0xee6   :  { %1834 = vlog2.f32 %v1276_v56 }
 0xef0   :  { %v1835_v57 = vpop.eup %1834 }
 0xef1   :  { %v1278_v58 = vmul.f32 0.6931472, %v1835_v57 }
 0xef3   :  { %v1279_v59 = vsub.f32 %v1272_v48, %v1278_v58 }
 0xef5   :  { %1280 = vst [vmem:[#allocation9] sm:$0xff] %v1279_v59 }
 0xef6   :  { %1935 = shalt.err (!%p1932_p8)
}
 0xef7   :  { %s1936_s4 = scalar_lea.hbm %s2361_s3, 128 }
 0xef8   :  { %p1937_p9 = scmp.ne.s32.totalorder %s2361_s3, %s1936_s4  ;;  %p1940_p10 = scmp.lt.u32.totalorder %s1936_s4, %s2361_s3 }
 0xefa   :  { %p1942_p11 = pnand %p1940_p10, %p1937_p9 }
 0xefc   :  { %1945 = shalt.err (!%p1942_p11)
}
 0xefd   :  { %1291 = dma.vmem_to_hbm [thread:$0]  %s1289_s1, 128, %s2361_s3, [#allocation5]  }
 0xefe   :  { %1950 = dma.done.wait [#allocation5], 128  }
 0xeff   :  { %1951 = vsyncadd [#allocation5], 4294967168 }
 0xf00   :  { %1952 = dma.done.wait [#allocation11], 128  }
 0xf01   :  { %1953 = vsyncadd [#allocation11], 4294967168 }
 0xf02   :  { %1308 = vsyncpa [#allocation4], 1 }
 0xf03   :  { %1309 = vsyncpa [#allocation7], 1 }
 0xf04   :  { %1310 = vsyncpa [#allocation5], 1 }
 0xf05   :  { %1311 = vsyncpa [#allocation11], 1 }

</bundles_post_ra>
